<compile_context>
chip_gen: v6e
topology: v6e:2x2x1
jax: 0.10.0
libtpu: 0.0.40
codegen_flags: <defaults>
</compile_context>

<pallas_src>
import functools

import jax
import jax.numpy as jnp
from jax.experimental import pallas as pl
from jax.experimental.pallas import tpu as pltpu


# ----------------------------------------------------------------------------
# Small helpers
# ----------------------------------------------------------------------------
def _round_up(x, m):
    return ((x + m - 1) // m) * m


def _largest_tile(padded, unit, cap):
    """Largest multiple of `unit` that divides `padded` and is <= cap (padded % unit == 0)."""
    cap = max(unit, min(cap, padded))
    best = unit
    t = unit
    while t <= cap:
        if padded % t == 0:
            best = t
        t += unit
    return best


# ----------------------------------------------------------------------------
# Fused matmul kernel: (M,K)@(K,N) in bf16 on the MXU, f32 accumulation,
# epilogue = (+ shift) (+ residual) (+ ReLU) at the last K step.
# ----------------------------------------------------------------------------
def _matmul_kernel(a_ref, b_ref, shift_ref, o_ref, acc_ref, *, relu):
    k = pl.program_id(2)

    @pl.when(k == 0)
    def _init():
        acc_ref[...] = jnp.zeros_like(acc_ref)

    acc_ref[...] += jnp.dot(a_ref[...], b_ref[...], preferred_element_type=jnp.float32)

    @pl.when(k == pl.num_programs(2) - 1)
    def _finalize():
        out = acc_ref[...] + shift_ref[...]
        if relu:
            out = jnp.maximum(out, 0.0)
        o_ref[...] = out


def _matmul_res_kernel(a_ref, b_ref, shift_ref, res_ref, o_ref, acc_ref, *, relu):
    k = pl.program_id(2)

    @pl.when(k == 0)
    def _init():
        acc_ref[...] = jnp.zeros_like(acc_ref)

    acc_ref[...] += jnp.dot(a_ref[...], b_ref[...], preferred_element_type=jnp.float32)

    @pl.when(k == pl.num_programs(2) - 1)
    def _finalize():
        out = acc_ref[...] + shift_ref[...] + res_ref[...]
        if relu:
            out = jnp.maximum(out, 0.0)
        o_ref[...] = out


def _fused_matmul(a, b, shift, residual, relu):
    """a: (M, K), b: (K, N) [BN scale already folded], shift: (N,), residual: (M, N) or None.

    Returns (M, N) float32 = relu?(a @ b + shift [+ residual]).
    """
    M, K = a.shape
    _, N = b.shape

    Mp, Kp, Np = _round_up(M, 8), _round_up(K, 128), _round_up(N, 128)
    # Conservative, generation-safe tiles: fit comfortably in 16/32 MiB scoped VMEM
    # on v5e/v6e/v7x while keeping the MXU fed.  Tiles always divide the padded dims.
    tm = _largest_tile(Mp, 8, 256)
    tn = _largest_tile(Np, 128, 256)
    tk = _largest_tile(Kp, 128, 512)

    a = a.astype(jnp.bfloat16)
    b = b.astype(jnp.bfloat16)
    if (Mp, Kp) != (M, K):
        a = jnp.pad(a, ((0, Mp - M), (0, Kp - K)))
    if (Kp, Np) != (K, N):
        b = jnp.pad(b, ((0, Kp - K), (0, Np - N)))
    shift = shift.astype(jnp.float32).reshape(1, N)
    if Np != N:
        shift = jnp.pad(shift, ((0, 0), (0, Np - N)))

    has_res = residual is not None
    inputs = [a, b, shift]
    in_specs = [
        pl.BlockSpec((tm, tk), lambda i, j, k: (i, k)),
        pl.BlockSpec((tk, tn), lambda i, j, k: (k, j)),
        pl.BlockSpec((1, tn), lambda i, j, k: (0, j)),
    ]
    if has_res:
        residual = residual.astype(jnp.float32)
        if (Mp, Np) != (M, N):
            residual = jnp.pad(residual, ((0, Mp - M), (0, Np - N)))
        inputs.append(residual)
        in_specs.append(pl.BlockSpec((tm, tn), lambda i, j, k: (i, j)))
        kernel = functools.partial(_matmul_res_kernel, relu=relu)
    else:
        kernel = functools.partial(_matmul_kernel, relu=relu)

    flops = 2 * Mp * Np * Kp
    bytes_accessed = Mp * Kp * 2 + Kp * Np * 2 + Mp * Np * 4 + (Mp * Np * 4 if has_res else 0)

    out = pl.pallas_call(
        kernel,
        out_shape=jax.ShapeDtypeStruct((Mp, Np), jnp.float32),
        grid_spec=pltpu.PrefetchScalarGridSpec(
            num_scalar_prefetch=0,
            grid=(Mp // tm, Np // tn, Kp // tk),
            in_specs=in_specs,
            out_specs=pl.BlockSpec((tm, tn), lambda i, j, k: (i, j)),
            scratch_shapes=[pltpu.VMEM((tm, tn), jnp.float32)],
        ),
        compiler_params=pltpu.CompilerParams(
            dimension_semantics=("parallel", "parallel", "arbitrary"),
            vmem_limit_bytes=32 * 1024 * 1024,
        ),
        cost_estimate=pl.CostEstimate(
            flops=flops, transcendentals=0, bytes_accessed=bytes_accessed),
    )(*inputs)

    if (Mp, Np) != (M, N):
        out = out[:M, :N]
    return out


# ----------------------------------------------------------------------------
# Row-tiled pooling / normalization kernels
# ----------------------------------------------------------------------------
def _max_axis0_kernel(x_ref, o_ref):
    o_ref[...] = jnp.max(x_ref[...], axis=0)


def _max_over_axis0(x):
    """x: (K, M, C) -> (M, C) max over leading axis, tiled over M rows."""
    K, M, C = x.shape
    if M <= 512:
        Mp, bm = M, M
    else:
        Mp = _round_up(M, 8)
        if Mp != M:
            x = jnp.pad(x, ((0, 0), (0, Mp - M), (0, 0)))
        bm = _largest_tile(Mp, 8, 512)
    out = pl.pallas_call(
        _max_axis0_kernel,
        out_shape=jax.ShapeDtypeStruct((Mp, C), x.dtype),
        grid_spec=pltpu.PrefetchScalarGridSpec(
            num_scalar_prefetch=0,
            grid=(Mp // bm,),
            in_specs=[pl.BlockSpec((K, bm, C), lambda i: (0, i, 0))],
            out_specs=pl.BlockSpec((bm, C), lambda i: (i, 0)),
        ),
        compiler_params=pltpu.CompilerParams(dimension_semantics=("parallel",)),
    )(x)
    return out[:M] if Mp != M else out


def _hpool_l2norm_kernel(x_ref, o_ref):
    # max over W, then L2-normalize over channels (clamp(1e-12).sqrt() like PyTorch).
    m = jnp.max(x_ref[...], axis=1)
    ss = jnp.sum(m * m, axis=-1, keepdims=True)
    o_ref[...] = m / jnp.sqrt(jnp.maximum(ss, 1e-12))


@jax.jit
def horizontal_maxpool_l2norm(x):
    """x: (N, Hf, Wf, C) -> (N, C, Hf): HorizontalMaxPool2d + channel L2 normalization."""
    N, Hf, Wf, C = x.shape
    M = N * Hf
    xr = x.reshape(M, Wf, C)
    if M <= 512:
        Mp, bm = M, M
    else:
        Mp = _round_up(M, 8)
        if Mp != M:
            xr = jnp.pad(xr, ((0, Mp - M), (0, 0), (0, 0)))
        bm = _largest_tile(Mp, 8, 512)
    out = pl.pallas_call(
        _hpool_l2norm_kernel,
        out_shape=jax.ShapeDtypeStruct((Mp, C), jnp.float32),
        grid_spec=pltpu.PrefetchScalarGridSpec(
            num_scalar_prefetch=0,
            grid=(Mp // bm,),
            in_specs=[pl.BlockSpec((bm, Wf, C), lambda i: (i, 0, 0))],
            out_specs=pl.BlockSpec((bm, C), lambda i: (i, 0)),
        ),
        compiler_params=pltpu.CompilerParams(dimension_semantics=("parallel",)),
    )(xr.astype(jnp.float32))
    if Mp != M:
        out = out[:M]
    return jnp.transpose(out.reshape(N, Hf, C), (0, 2, 1))


def _gap_kernel(x_ref, o_ref, *, inv_p):
    @pl.when(pl.program_id(0) == 0)
    def _init():
        o_ref[...] = jnp.zeros_like(o_ref)

    o_ref[...] += jnp.sum(x_ref[...], axis=1) * inv_p


@jax.jit
def global_avg_pool(x):
    """x: (N, Hf, Wf, C) -> (N, C) global average pool, tiled over the pooled axis."""
    N, Hf, Wf, C = x.shape
    P = Hf * Wf
    xr = x.reshape(N, P, C).astype(jnp.float32)
    if P <= 8:
        Pp, bp = P, P
    else:
        Pp = _round_up(P, 8)
        if Pp != P:
            xr = jnp.pad(xr, ((0, 0), (0, Pp - P), (0, 0)))
        budget_rows = max(8, (((2 * 1024 * 1024) // max(1, N * C * 4)) // 8) * 8)
        bp = _largest_tile(Pp, 8, min(budget_rows, Pp))
    out = pl.pallas_call(
        functools.partial(_gap_kernel, inv_p=1.0 / float(P)),
        out_shape=jax.ShapeDtypeStruct((N, C), jnp.float32),
        grid_spec=pltpu.PrefetchScalarGridSpec(
            num_scalar_prefetch=0,
            grid=(Pp // bp,),
            in_specs=[pl.BlockSpec((N, bp, C), lambda i: (0, i, 0))],
            out_specs=pl.BlockSpec((N, C), lambda i: (0, 0)),
        ),
        compiler_params=pltpu.CompilerParams(dimension_semantics=("arbitrary",)),
    )(xr)
    return out


# ----------------------------------------------------------------------------
# Convolution / pooling wrappers (slicing & reshape glue; compute in Pallas)
# ----------------------------------------------------------------------------
def _im2col(x, kh, kw, stride, padding):
    """x: (N, H, W, C) f32 -> ((N*Ho*Wo, kh*kw*C) bf16, (N, Ho, Wo))."""
    N, H, W, C = x.shape
    x = x.astype(jnp.bfloat16)   # halve HBM traffic of the im2col intermediate
    if padding:
        x = jnp.pad(x, ((0, 0), (padding, padding), (padding, padding), (0, 0)))
    Ho = (H + 2 * padding - kh) // stride + 1
    Wo = (W + 2 * padding - kw) // stride + 1
    if kh == 1 and kw == 1:
        if stride != 1:
            x = x[:, ::stride, ::stride, :]
        return x.reshape(N * Ho * Wo, C), (N, Ho, Wo)
    # TODO(synk): the kh*kw-expanded patch matrix is still materialized in HBM; an
    # in-kernel tap loop (grid axis over the 9 taps indexing the padded input) would
    # cut that DMA further but needs Element-offset BlockSpecs that break on small
    # spatial dims, so it is not done here.
    cols = []
    for dy in range(kh):
        for dx in range(kw):
            cols.append(x[:, dy:dy + stride * (Ho - 1) + 1:stride,
                          dx:dx + stride * (Wo - 1) + 1:stride, :])
    patches = jnp.concatenate(cols, axis=-1)  # (N, Ho, Wo, kh*kw*C)
    return patches.reshape(N * Ho * Wo, kh * kw * C), (N, Ho, Wo)


@functools.partial(jax.jit, static_argnames=("stride", "padding", "relu"))
def conv_bn(x, w, bn, residual, stride, padding, relu):
    """Conv2d(bias=False) + eval-mode BatchNorm2d (+ optional fused residual add + ReLU).

    x: (N, H, W, Cin) NHWC; w: (Cout, Cin, kh, kw) (PyTorch layout);
    bn = (gamma, beta, running_mean, running_var); residual: (N, Ho, Wo, Cout) or None.
    """
    Cout, Cin, kh, kw = w.shape
    a, (N, Ho, Wo) = _im2col(x, kh, kw, stride, padding)
    wmat = jnp.transpose(w, (2, 3, 1, 0)).reshape(kh * kw * Cin, Cout)
    gamma, beta, mean, var = bn
    scale = gamma / jnp.sqrt(var + 1e-5)
    shift = beta - mean * scale
    wmat = wmat * scale[None, :]          # fold BN scale into the weights
    res2d = None if residual is None else residual.reshape(N * Ho * Wo, Cout)
    out = _fused_matmul(a, wmat, shift, res2d, relu)
    return out.reshape(N, Ho, Wo, Cout)


@jax.jit
def max_pool_3x3_s2(x):
    """MaxPool2d(kernel=3, stride=2, padding=1) on NHWC."""
    N, H, W, C = x.shape
    k, s, p = 3, 2, 1
    xp = jnp.pad(x, ((0, 0), (p, p), (p, p), (0, 0)), constant_values=-jnp.inf)
    Ho = (H + 2 * p - k) // s + 1
    Wo = (W + 2 * p - k) // s + 1
    wins = []
    for dy in range(k):
        for dx in range(k):
            wins.append(xp[:, dy:dy + s * (Ho - 1) + 1:s,
                           dx:dx + s * (Wo - 1) + 1:s, :])
    stacked = jnp.stack(wins, axis=0).reshape(k * k, N * Ho * Wo, C)
    out = _max_over_axis0(stacked)
    return out.reshape(N, Ho, Wo, C)


@jax.jit
def linear(f, w, b):
    """f: (N, 2048), w: (num_classes, 2048), b: (num_classes,) -> (N, num_classes).

    The output channel dim is padded to a lane multiple (128) inside _fused_matmul and
    sliced back, avoiding masked partial stores for tiny num_classes.
    """
    return _fused_matmul(f, jnp.transpose(w), b, None, relu=False)


# ----------------------------------------------------------------------------
# Parameter construction (deterministic, synthetic weights)
# ----------------------------------------------------------------------------
class _KeyGen:
    def __init__(self, key):
        self._key = key
        self._i = 0

    def __call__(self):
        self._i += 1
        return jax.random.fold_in(self._key, self._i)


def _conv_w(key, cout, cin, kh, kw):
    fan_in = cin * kh * kw
    return jax.random.normal(key, (cout, cin, kh, kw), jnp.float32) * jnp.sqrt(2.0 / fan_in)


def _bn_p(c):
    # (gamma, beta, running_mean, running_var) — PyTorch defaults.
    return (jnp.ones((c,), jnp.float32), jnp.zeros((c,), jnp.float32),
            jnp.zeros((c,), jnp.float32), jnp.ones((c,), jnp.float32))


def _bottleneck_params(kg, inplanes, width, stride):
    p = {
        "conv1": _conv_w(kg(), width, inplanes, 1, 1), "bn1": _bn_p(width),
        "conv2": _conv_w(kg(), width, width, 3, 3), "bn2": _bn_p(width),
        "conv3": _conv_w(kg(), width * 4, width, 1, 1), "bn3": _bn_p(width * 4),
        "stride": stride,
    }
    if stride != 1 or inplanes != width * 4:
        p["down_w"] = _conv_w(kg(), width * 4, inplanes, 1, 1)
        p["down_bn"] = _bn_p(width * 4)
    return p


def init_resnet101_params(key, num_classes):
    kg = _KeyGen(key)
    params = {
        "conv1": _conv_w(kg(), 64, 3, 7, 7),
        "bn1": _bn_p(64),
        "layers": [],
    }
    inplanes = 64
    # ResNet-101 config: (width, num_blocks, stride)
    for width, nblocks, stride in [(64, 3, 1), (128, 4, 2), (256, 23, 2), (512, 3, 2)]:
        layer = []
        for bi in range(nblocks):
            s = stride if bi == 0 else 1
            layer.append(_bottleneck_params(kg, inplanes, width, s))
            inplanes = width * 4
        params["layers"].append(layer)
    # Classifier: Linear(2048, num_classes) with bias (PyTorch default-style init).
    bound = 1.0 / jnp.sqrt(2048.0)
    params["fc_w"] = jax.random.uniform(kg(), (num_classes, 2048), jnp.float32, -bound, bound)
    params["fc_b"] = jax.random.uniform(kg(), (num_classes,), jnp.float32, -bound, bound)
    return params


# ----------------------------------------------------------------------------
# Forward pass (mirrors ResNet101.forward, aligned=False)
# ----------------------------------------------------------------------------
def _bottleneck_forward(x, p):
    identity = x
    out = conv_bn(x, p["conv1"], p["bn1"], None, stride=1, padding=0, relu=True)
    out = conv_bn(out, p["conv2"], p["bn2"], None, stride=p["stride"], padding=1, relu=True)
    if "down_w" in p:
        identity = conv_bn(x, p["down_w"], p["down_bn"], None,
                           stride=p["stride"], padding=0, relu=False)
    # conv3 + BN + residual add + ReLU fused into a single Pallas matmul epilogue.
    out = conv_bn(out, p["conv3"], p["bn3"], identity, stride=1, padding=0, relu=True)
    return out


def resnet101_forward(params, x_nchw, training=False, loss=frozenset({"softmax"})):
    """x_nchw: (N, 3, H, W) float32, PyTorch NCHW convention."""
    # TODO(synk): training-mode BatchNorm batch statistics not implemented; running
    #             (eval) statistics are used for all BN layers.
    # TODO(synk): aligned=True branch (BatchNorm2d+ReLU+1x1 Conv on local features)
    #             not implemented; this models the default aligned=False module.
    x = jnp.transpose(x_nchw, (0, 2, 3, 1)).astype(jnp.float32)  # -> NHWC

    # self.base = resnet101 children[:-2]
    x = conv_bn(x, params["conv1"], params["bn1"], None, stride=2, padding=3, relu=True)
    x = max_pool_3x3_s2(x)
    for layer in params["layers"]:
        for blk in layer:
            x = _bottleneck_forward(x, blk)

    lf = None
    if not training:
        # HorizontalMaxPool2d + L2 normalization over channels, fused in one kernel.
        lf = horizontal_maxpool_l2norm(x)                        # (N, 2048, Hf)

    # F.avg_pool2d(x, x.size()[2:]) -> global average pool, then flatten
    f = global_avg_pool(x)                                       # (N, 2048)

    if not training:
        return f, lf

    y = linear(f, params["fc_w"], params["fc_b"])

    if loss == frozenset({"softmax"}):
        return y
    elif loss == frozenset({"metric"}):
        return f
    elif loss == frozenset({"softmax", "metric"}):
        return y, f
    else:
        raise KeyError("Unsupported loss: {}".format(loss))


# ----------------------------------------------------------------------------
if __name__ == "__main__":
    key = jax.random.PRNGKey(0)
    num_classes = 10
    params = init_resnet101_params(jax.random.fold_in(key, 1), num_classes)

    # Small input consistent with the module: NCHW, 3 input channels, 32x downsampling.
    x = jax.random.normal(jax.random.fold_in(key, 2), (2, 3, 64, 64), jnp.float32)

    # Eval path (not self.training): returns (f, lf)
    f, lf = resnet101_forward(params, x, training=False)
    # Training path with loss={'softmax'}: returns logits y
    y = resnet101_forward(params, x, training=True, loss=frozenset({"softmax"}))

    jax.block_until_ready((f, lf, y))
    assert f.shape == (2, 2048)
    assert lf.shape == (2, 2048, 2)   # (N, C, Hf) with Hf = 64/32 = 2
    assert y.shape == (2, num_classes)
    print("KERNEL_OK")
</pallas_src>

<mosaic_0001>
module attributes {stable_mosaic.version = 11 : i64} {
  func.func @_matmul_kernel(%arg0: i32, %arg1: i32, %arg2: i32, %arg3: memref<256x256xbf16, #tpu.memory_space<vmem>>, %arg4: memref<256x128xbf16, #tpu.memory_space<vmem>>, %arg5: memref<1x128xf32, #tpu.memory_space<vmem>>, %arg6: memref<256x128xf32, #tpu.memory_space<vmem>>, %arg7: memref<256x128xf32, #tpu.memory_space<vmem>>) attributes {dimension_semantics = [#tpu.dimension_semantics<parallel>, #tpu.dimension_semantics<parallel>, #tpu.dimension_semantics<arbitrary>], iteration_bounds = array<i64: 8, 1, 1>, scalar_prefetch = 0 : i64, scratch_operands = 1 : i64, tpu.core_type = #tpu.core_type<tc>, window_params = [{transform_indices = @transform_0, window_bounds = array<i64: 256, 256>}, {transform_indices = @transform_1, window_bounds = array<i64: 256, 128>}, {transform_indices = @transform_2, window_bounds = array<i64: 1, 128>}, {transform_indices = @transform_3, window_bounds = array<i64: 256, 128>}]} {
    %c0_i32 = arith.constant 0 : i32
    %0 = arith.cmpi eq, %arg2, %c0_i32 : i32
    %1 = arith.extui %0 : i1 to i32
    %c0_i32_0 = arith.constant 0 : i32
    %2 = arith.cmpi ne, %1, %c0_i32_0 : i32
    scf.if %2 {
      %cst_10 = arith.constant 0.000000e+00 : f32
      %12 = vector.broadcast %cst_10 : f32 to vector<256x128xf32>
      %c0_11 = arith.constant 0 : index
      %c0_12 = arith.constant 0 : index
      %13 = vector.load %arg7[%c0_11, %c0_12] : memref<256x128xf32, #tpu.memory_space<vmem>>, vector<256x128xf32>
      tpu.vector_store %arg7[%c0_11, %c0_12], %12 {strides = array<i32>} : memref<256x128xf32, #tpu.memory_space<vmem>>, vector<256x128xf32>,
    } else {
    }
    %c0 = arith.constant 0 : index
    %c0_1 = arith.constant 0 : index
    %3 = vector.load %arg7[%c0, %c0_1] : memref<256x128xf32, #tpu.memory_space<vmem>>, vector<256x128xf32>
    %c0_2 = arith.constant 0 : index
    %c0_3 = arith.constant 0 : index
    %4 = vector.load %arg3[%c0_2, %c0_3] : memref<256x256xbf16, #tpu.memory_space<vmem>>, vector<256x256xbf16>
    %c0_4 = arith.constant 0 : index
    %c0_5 = arith.constant 0 : index
    %5 = vector.load %arg4[%c0_4, %c0_5] : memref<256x128xbf16, #tpu.memory_space<vmem>>, vector<256x128xbf16>
    %cst = arith.constant dense<0.000000e+00> : vector<256x128xf32>
    %6 = tpu.matmul %4, %5, %cst {dimension_numbers = #tpu.dot_dimension_numbers<[1], [0], [0], [1], [0, 0, 1, 1], [], []>} : vector<256x256xbf16>, vector<256x128xbf16>, vector<256x128xf32> -> vector<256x128xf32>
    %7 = arith.addf %3, %6 : vector<256x128xf32>
    %c0_6 = arith.constant 0 : index
    %c0_7 = arith.constant 0 : index
    %8 = vector.load %arg7[%c0_6, %c0_7] : memref<256x128xf32, #tpu.memory_space<vmem>>, vector<256x128xf32>
    tpu.vector_store %arg7[%c0_6, %c0_7], %7 {strides = array<i32>} : memref<256x128xf32, #tpu.memory_space<vmem>>, vector<256x128xf32>,
    %c0_i32_8 = arith.constant 0 : i32
    %9 = arith.cmpi eq, %arg2, %c0_i32_8 : i32
    %10 = arith.extui %9 : i1 to i32
    %c0_i32_9 = arith.constant 0 : i32
    %11 = arith.cmpi ne, %10, %c0_i32_9 : i32
    scf.if %11 {
      %c0_10 = arith.constant 0 : index
      %c0_11 = arith.constant 0 : index
      %12 = vector.load %arg7[%c0_10, %c0_11] : memref<256x128xf32, #tpu.memory_space<vmem>>, vector<256x128xf32>
      %c0_12 = arith.constant 0 : index
      %c0_13 = arith.constant 0 : index
      %13 = vector.load %arg5[%c0_12, %c0_13] : memref<1x128xf32, #tpu.memory_space<vmem>>, vector<1x128xf32>
      %14 = vector.broadcast %13 : vector<1x128xf32> to vector<256x128xf32>
      %15 = arith.addf %12, %14 : vector<256x128xf32>
      %cst_14 = arith.constant 0.000000e+00 : f32
      %16 = vector.broadcast %cst_14 : f32 to vector<256x128xf32>
      %17 = arith.maximumf %15, %16 : vector<256x128xf32>
      %c0_15 = arith.constant 0 : index
      %c0_16 = arith.constant 0 : index
      %18 = vector.load %arg6[%c0_15, %c0_16] : memref<256x128xf32, #tpu.memory_space<vmem>>, vector<256x128xf32>
      tpu.vector_store %arg6[%c0_15, %c0_16], %17 {strides = array<i32>} : memref<256x128xf32, #tpu.memory_space<vmem>>, vector<256x128xf32>,
    } else {
    }
    return
  }
  func.func @transform_0(%arg0: i32, %arg1: i32, %arg2: i32) -> (i32, i32) {
    %c0_i32 = arith.constant 0 : i32
    return %arg0, %arg2 : i32, i32
  }
  func.func @transform_1(%arg0: i32, %arg1: i32, %arg2: i32) -> (i32, i32) {
    %c0_i32 = arith.constant 0 : i32
    return %arg2, %arg1 : i32, i32
  }
  func.func @transform_2(%arg0: i32, %arg1: i32, %arg2: i32) -> (i32, i32) {
    %c0_i32 = arith.constant 0 : i32
    %c0_i32_0 = arith.constant 0 : i32
    return %c0_i32, %arg1 : i32, i32
  }
  func.func @transform_3(%arg0: i32, %arg1: i32, %arg2: i32) -> (i32, i32) {
    %c0_i32 = arith.constant 0 : i32
    return %arg0, %arg1 : i32, i32
  }
}

</mosaic_0001>

<bundles_post_ra>
// kernel: conv_bn.1
= control target key start
LH: loop header
LB: loop body
LE: loop exit
PB: predicated region body
PF: predicated region fallthrough
CT: control target
= control target key end

     0   :  { %8 = vsyncpa [#allocation4], 0  ;;  %s1825_s0 = inlined_call_operand.vmem [shape: bf16[2048,256], index: 0, kind: input, shape index: {}]   ;;  %s1826_s1 = inlined_call_operand.vmem [shape: bf16[256,128], index: 1, kind: input, shape index: {}]   ;;  %s1827_s2 = inlined_call_operand.vmem [shape: f32[1,128], index: 2, kind: input, shape index: {}]   ;;  %s1828_s3 = inlined_call_operand.hbm [shape: f32[2048,128], index: 3, kind: output, shape index: {}]  }
   0x1   :  { %10 = vsyncpa [#allocation4 + $0x1], 0  ;;  %s1554_s12 = smov 0   ;;  %s1556_s13 = smov 0  }
   0x2   :  { %s1558_s14 = smov 0   ;;  %s1560_s15 = smov 0  }
   0x3   :  { %s1562_s16 = smov 0   ;;  %s1564_s17 = smov 0  }
   0x4 LB: > { %s1137_s18 = sadd.s32 4294967295, %s1529_s17   ;;  %s1138_s19 = sadd.s32 4294967294, %s1529_s17   ;;  %s1529_s17 = sphi %s1564_s17, %s16_s17   ;;  %s1525_s16 = sphi %s1562_s16, %s1835_s16   ;;  %s1521_s15 = sphi %s1560_s15, %s1834_s15   ;;  %s1517_s14 = sphi %s1558_s14, %s1833_s14   ;;  %s1513_s13 = sphi %s1556_s13, %s1832_s13   ;;  %s1509_s12 = sphi %s1554_s12, %s1831_s12  }
   0x5   : > { %s35_s20 = sadd.s32 1, %s1525_s16  ;;  %s126_s21 = sadd.s32 1, %s1517_s14 }
   0x6   : > { %p37_p0 = scmp.ge.s32.totalorder %s35_s20, 8  ;;  %p136_p1 = scmp.ne.s32.totalorder %s1517_s14, %s1513_s13 }
   0x7   : > { %p137_p2 = scmp.eq.s32.totalorder %s1137_s18, 7  ;;  %p142_p3 = scmp.ne.s32.totalorder %s1513_s13, %s1509_s12 }
   0x8   : > { %s1837_s20 = smov (%p37_p0, %s35_s20), 0  ;;  %p143_p5 = scmp.eq.s32.totalorder %s1138_s19, 7 }
   0x9   : > { %p1594_p4 = por %p137_p2, %p136_p1  ;;  %s121_s23 = ssub.s32 %s1525_s16, %s1837_s20 }
   0xa   : > { %p1143_p6 = scmp.ge.s32.totalorder %s1529_s17, 1  ;;  %p124_p7 = scmp.eq.s32.totalorder %s121_s23, 0 }
   0xb   : > { %p1601_p8 = por %p143_p5, %p142_p3  ;;  %p194_p9 = scmp.lt.s32.totalorder %s1529_s17, 9 }
   0xc   : > { %s1607_s25 = scalar_select %p124_p7, %s1517_s14, %s126_s21  }
   0xd   : > { %p195_p10 = pnand %p1143_p6, %p194_p9 }
   0xe   : > { %s1145_s28 = sshll.u32 (!%p195_p10), %s1521_s15, 5  ;;  %s231_s30 = sand.u32 (!%p195_p10), 1, %s1513_s13  }
   0xf   : > { %198 = sbr.rel (%p195_p10) target bundleno = 328 (0x148), region = 32  ;;  %p236_p11 = scmp.lt.s32.totalorder (!%p195_p10), %s1145_s28, 255 }
  0x10   : > { %s1144_s7 = sshll.u32 (!%p195_p10), %s231_s30, 8  ;;  %s1531_s19 = smov (!%p195_p10), [#allocation3]  }
  0x11   : > { %s1457_s21 = sshll.u32 (!%p195_p10), %s1531_s19, 4  ;;  %s1458_s21 = int_to_ptr.vmem [resolvable:$false] %s1457_s21 }
  0x12   : > { %s1459_s23 = scalar_lea.vmem (!%p195_p10), %s1458_s21, 8192 }
  0x14   : > { %v1389_v0 = vld [vmem:[%s1826_s1 + $0x78] sm:$0xff]   ;;  %v1391_v2 = vld [vmem:[%s1826_s1 + $0x70] sm:$0xff]   ;;  %v1393_v4 = vld [vmem:[%s1826_s1 + $0x68] sm:$0xff]   ;;  %s1839_s28 = smov (!%p236_p11, %s1145_s28), 255 }
  0x15   : > { %v1390_v1 = vld [vmem:[%s1826_s1 + $0x38] sm:$0xff]   ;;  %1204 = vmatprep.subr.bf16.mxu0 %v1389_v0  ;;  %1316 = vmatprep.subr.bf16.mxu1 %v1389_v0  ;;  %v1392_v3 = vld [vmem:[%s1826_s1 + $0x30] sm:$0xff]   ;;  %v1394_v5 = vld [vmem:[%s1826_s1 + $0x28] sm:$0xff]   ;;  %s1202_s26 = sshll.u32 %s1839_s28, 3  ;;  %s1203_s28 = sshll.u32 %s1521_s15, 12 }
  0x16   : > { %1205 = vmatpush3.bf16.msra.mxu0 %v1390_v1  ;;  %1324 = vmatpush3.bf16.msra.mxu1 %v1390_v1  ;;  %v1395_v6 = vld [vmem:[%s1826_s1 + $0x60] sm:$0xff]   ;;  %v1397_v8 = vld [vmem:[%s1826_s1 + $0x58] sm:$0xff]   ;;  %s1640_s5 = scalar_lea.vmem %s1825_s0, %s1202_s26  ;;  %v1399_v10 = vld [vmem:[%s1826_s1 + $0x50] sm:$0xff]   ;;  %s1772_s11 = scalar_lea.hbm %s1828_s3, %s1203_s28 }
  0x17   : > { %1206 = vmatprep.subr.bf16.mxu0 %v1391_v2  ;;  %1317 = vmatprep.subr.bf16.mxu1 %v1391_v2  ;;  %v1396_v7 = vld [vmem:[%s1826_s1 + $0x20] sm:$0xff]   ;;  %v1398_v9 = vld [vmem:[%s1826_s1 + $0x18] sm:$0xff]   ;;  %v1400_v13 = vld [vmem:[%s1826_s1 + $0x10] sm:$0xff]   ;;  %s1780_s15 = scalar_lea.sflag [#allocation4], %s231_s30 }
  0x18   : > { %v1407_v11 = vld [vmem:[%s1640_s5 + $0x4] ss:$8 sps:$4 sm:$0xff]   ;;  %v1405_v18 = vld [vmem:[%s1640_s5] ss:$8 sps:$4 sm:$0xff]   ;;  %v1411_v20 = vld [vmem:[%s1640_s5 + $0x14] ss:$8 sps:$4 sm:$0xff]  }
  0x19   : > { %v1410_v12 = vld [vmem:[%s1640_s5 + $0x84] ss:$8 sps:$4 sm:$0xff]   ;;  %680 = vmatprep.mubr.bf16.mxu0 %v1407_v11  ;;  %v1408_v19 = vld [vmem:[%s1640_s5 + $0x80] ss:$8 sps:$4 sm:$0xff]   ;;  %v1413_v21 = vld [vmem:[%s1640_s5 + $0x94] ss:$8 sps:$4 sm:$0xff]  }
  0x1a   : > { %1207 = vmatpush3.bf16.msra.mxu0 %v1392_v3  ;;  %1325 = vmatpush3.bf16.msra.mxu1 %v1392_v3  ;;  %v1401_v14 = vld [vmem:[%s1826_s1 + $0x48] sm:$0xff]   ;;  %v1403_v16 = vld [vmem:[%s1826_s1 + $0x40] sm:$0xff]   ;;  %v1415_v22 = vld [vmem:[%s1640_s5 + $0x10] ss:$8 sps:$4 sm:$0xff]  }
  0x1b   : > { %1208 = vmatprep.subr.bf16.mxu0 %v1393_v4  ;;  %1318 = vmatprep.subr.bf16.mxu1 %v1393_v4  ;;  %v1402_v15 = vld [vmem:[%s1826_s1 + $0x8] sm:$0xff]   ;;  %v1404_v17 = vld [vmem:[%s1826_s1] sm:$0xff]   ;;  %v1416_v23 = vld [vmem:[%s1640_s5 + $0x90] ss:$8 sps:$4 sm:$0xff]  }
  0x1c   : > { %744 = vmatprep.mubr.bf16.mxu1 %v1410_v12  ;;  %v1417_v24 = vld [vmem:[%s1640_s5 + $0x24] ss:$8 sps:$4 sm:$0xff]   ;;  %v1421_v26 = vld [vmem:[%s1640_s5 + $0x20] ss:$8 sps:$4 sm:$0xff]   ;;  %v1423_v28 = vld [vmem:[%s1640_s5 + $0x34] ss:$8 sps:$4 sm:$0xff]  }
  0x1d   : > { %v1419_v25 = vld [vmem:[%s1640_s5 + $0xa4] ss:$8 sps:$4 sm:$0xff]   ;;  %v1422_v27 = vld [vmem:[%s1640_s5 + $0xa0] ss:$8 sps:$4 sm:$0xff]   ;;  %v1425_v29 = vld [vmem:[%s1640_s5 + $0xb4] ss:$8 sps:$4 sm:$0xff]  }
  0x1e   : > { %1209 = vmatpush3.bf16.msra.mxu0 %v1394_v5  ;;  %1326 = vmatpush3.bf16.msra.mxu1 %v1394_v5  ;;  %v1427_v30 = vld [vmem:[%s1640_s5 + $0x30] ss:$8 sps:$4 sm:$0xff]   ;;  %v1429_v32 = vld [vmem:[%s1640_s5 + $0x44] ss:$8 sps:$4 sm:$0xff]   ;;  %v1433_v34 = vld [vmem:[%s1640_s5 + $0x40] ss:$8 sps:$4 sm:$0xff]  }
  0x1f   : > { %1210 = vmatprep.subr.bf16.mxu0 %v1395_v6  ;;  %1319 = vmatprep.subr.bf16.mxu1 %v1395_v6  ;;  %v1428_v31 = vld [vmem:[%s1640_s5 + $0xb0] ss:$8 sps:$4 sm:$0xff]   ;;  %v1431_v33 = vld [vmem:[%s1640_s5 + $0xc4] ss:$8 sps:$4 sm:$0xff]   ;;  %v1434_v35 = vld [vmem:[%s1640_s5 + $0xc0] ss:$8 sps:$4 sm:$0xff]  }
  0x20   : > { %v1435_v36 = vld [vmem:[%s1640_s5 + $0x54] ss:$8 sps:$4 sm:$0xff]   ;;  %v1439_v38 = vld [vmem:[%s1640_s5 + $0x50] ss:$8 sps:$4 sm:$0xff]   ;;  %v1441_v40 = vld [vmem:[%s1640_s5 + $0x64] ss:$8 sps:$4 sm:$0xff]  }
  0x21   : > { %v1437_v37 = vld [vmem:[%s1640_s5 + $0xd4] ss:$8 sps:$4 sm:$0xff]   ;;  %v1440_v39 = vld [vmem:[%s1640_s5 + $0xd0] ss:$8 sps:$4 sm:$0xff]   ;;  %v1443_v41 = vld [vmem:[%s1640_s5 + $0xe4] ss:$8 sps:$4 sm:$0xff]  }
  0x22   : > { %1211 = vmatpush3.bf16.msra.mxu0 %v1396_v7  ;;  %1327 = vmatpush3.bf16.msra.mxu1 %v1396_v7  ;;  %v1445_v42 = vld [vmem:[%s1640_s5 + $0x60] ss:$8 sps:$4 sm:$0xff]   ;;  %v1447_v44 = vld [vmem:[%s1640_s5 + $0x74] ss:$8 sps:$4 sm:$0xff]   ;;  %v1451_v46 = vld [vmem:[%s1640_s5 + $0x70] ss:$8 sps:$4 sm:$0xff]  }
  0x23   : > { %1212 = vmatprep.subr.bf16.mxu0 %v1397_v8  ;;  %1320 = vmatprep.subr.bf16.mxu1 %v1397_v8  ;;  %v1446_v43 = vld [vmem:[%s1640_s5 + $0xe0] ss:$8 sps:$4 sm:$0xff]   ;;  %v1449_v45 = vld [vmem:[%s1640_s5 + $0xf4] ss:$8 sps:$4 sm:$0xff]   ;;  %v1452_v47 = vld [vmem:[%s1640_s5 + $0xf0] ss:$8 sps:$4 sm:$0xff]  }
  0x24   : > { %v1699_v51 = vld [vmem:[%s1827_s2] ss:$0 sm:$0xff]  ;;  %s1705_s5 = scalar_lea.vmem [#allocation3], %s1144_s7 }
  0x25   : > { %s1026_s8 = sshll.u32 %s1705_s5, 4  ;;  %s1774_s8 = int_to_ptr.vmem [resolvable:$true] %s1026_s8 }
  0x26   : > { %1213 = vmatpush3.bf16.msra.mxu0 %v1398_v9  ;;  %1328 = vmatpush3.bf16.msra.mxu1 %v1398_v9  ;;  %s1453_s18 = scalar_lea.vmem %s1774_s8, 4096  ;;  %p1460_p1 = scmp.lt.s32.totalorder %s1774_s8, %s1458_s21 }
  0x27   : > { %1214 = vmatprep.subr.bf16.mxu0 %v1399_v10  ;;  %1321 = vmatprep.subr.bf16.mxu1 %v1399_v10  ;;  %p1454_p12 = scmp.ne.s32.totalorder %s1774_s8, %s1453_s18  ;;  %p1461_p2 = scmp.lt.s32.totalorder %s1459_s23, %s1453_s18 }
  0x29   : > { %p1455_p13 = pnand %p1454_p12, %p1594_p4  ;;  %p1462_p3 = por %p1461_p2, %p1460_p1 }
  0x2a   : > { %1215 = vmatpush3.bf16.msra.mxu0 %v1400_v13  ;;  %1329 = vmatpush3.bf16.msra.mxu1 %v1400_v13 }
  0x2b   : > { %1216 = vmatprep.subr.bf16.mxu0 %v1401_v14  ;;  %1322 = vmatprep.subr.bf16.mxu1 %v1401_v14  ;;  %p1456_p0 = pneg %p1455_p13 }
  0x2d   : > { %p1463_p5 = pnand %p1462_p3, %p1456_p0 }
  0x2e   : > { %1217 = vmatpush3.bf16.msra.mxu0 %v1402_v15  ;;  %1330 = vmatpush3.bf16.msra.mxu1 %v1402_v15 }
  0x2f   : > { %1218 = vmatprep.subr.bf16.mxu0 %v1403_v16  ;;  %1323 = vmatprep.subr.bf16.mxu1 %v1403_v16 }
  0x32   : > { %1219 = vmatpush3.bf16.msra.mxu0 %v1404_v17  ;;  %1331 = vmatpush3.bf16.msra.mxu1 %v1404_v17 }
  0x35   : > { %681 = vmatmul.mubr.bf16.vlgmr.msra.gmra.mxu0 %v1405_v18  ;;  %745 = vmatmul.mubr.bf16.vlgmr.msra.gmra.mxu1 %v1408_v19 }
  0x36   : > { %688 = vmatprep.mubr.bf16.mxu0 %v1411_v20  ;;  %752 = vmatprep.mubr.bf16.mxu1 %v1413_v21 }
  0x3d   : > { %689 = vmatmul.mubr.bf16.gmra.mxu0 %v1415_v22  ;;  %753 = vmatmul.mubr.bf16.gmra.mxu1 %v1416_v23 }
  0x3e   : > { %696 = vmatprep.mubr.bf16.mxu0 %v1417_v24  ;;  %760 = vmatprep.mubr.bf16.mxu1 %v1419_v25 }
  0x45   : > { %697 = vmatmul.mubr.bf16.gmra.mxu0 %v1421_v26  ;;  %761 = vmatmul.mubr.bf16.gmra.mxu1 %v1422_v27 }
  0x46   : > { %704 = vmatprep.mubr.bf16.mxu0 %v1423_v28  ;;  %768 = vmatprep.mubr.bf16.mxu1 %v1425_v29 }
  0x4d   : > { %705 = vmatmul.mubr.bf16.gmra.mxu0 %v1427_v30  ;;  %769 = vmatmul.mubr.bf16.gmra.mxu1 %v1428_v31 }
  0x4e   : > { %712 = vmatprep.mubr.bf16.mxu0 %v1429_v32  ;;  %776 = vmatprep.mubr.bf16.mxu1 %v1431_v33 }
  0x55   : > { %713 = vmatmul.mubr.bf16.gmra.mxu0 %v1433_v34  ;;  %777 = vmatmul.mubr.bf16.gmra.mxu1 %v1434_v35 }
  0x56   : > { %720 = vmatprep.mubr.bf16.mxu0 %v1435_v36  ;;  %784 = vmatprep.mubr.bf16.mxu1 %v1437_v37 }
  0x5d   : > { %721 = vmatmul.mubr.bf16.gmra.mxu0 %v1439_v38  ;;  %785 = vmatmul.mubr.bf16.gmra.mxu1 %v1440_v39 }
  0x5e   : > { %728 = vmatprep.mubr.bf16.mxu0 %v1441_v40  ;;  %792 = vmatprep.mubr.bf16.mxu1 %v1443_v41 }
  0x65   : > { %729 = vmatmul.mubr.bf16.gmra.mxu0 %v1445_v42  ;;  %793 = vmatmul.mubr.bf16.gmra.mxu1 %v1446_v43 }
  0x66   : > { %736 = vmatprep.mubr.bf16.mxu0 %v1447_v44  ;;  %800 = vmatprep.mubr.bf16.mxu1 %v1449_v45 }
  0x6d   : > { %737 = vmatmul.mubr.bf16.gmra.mxu0 %v1451_v46  ;;  %801 = vmatmul.mubr.bf16.gmra.mxu1 %v1452_v47 }
  0xf5   : > { %v1220_v48 = vpop.f32.mrf.mxu0  ;;  %v1268_v49 = vpop.f32.mrf.mxu1 }
  0xf7   : > { %v1221_v50 = vpop.f32.mrf.mxu0  ;;  %v1269_v52 = vpop.f32.mrf.mxu1 }
  0xf8   : > { %v1222_v53 = vadd.f32 %v1221_v50, %v1220_v48  ;;  %v1270_v54 = vadd.f32 %v1269_v52, %v1268_v49 }
  0xf9   : > { %v1223_v55 = vpop.f32.mrf.mxu0  ;;  %v1271_v56 = vpop.f32.mrf.mxu1 }
  0xfa   : > { %v915_v57 = vadd.f32 %v1222_v53, %v1699_v51  ;;  %v931_v58 = vadd.f32 %v1270_v54, %v1699_v51 }
  0xfb   : > { %v1224_v59 = vpop.f32.mrf.mxu0  ;;  %v1272_v60 = vpop.f32.mrf.mxu1 }
  0xfc   : > { %v947_v61 = vmax.f32 %v915_v57, 0.0  ;;  %v963_v62 = vmax.f32 %v931_v58, 0.0  ;;  %v1225_v63 = vadd.f32 %v1224_v59, %v1223_v55  ;;  %v1273_v0 = vadd.f32 %v1272_v60, %v1271_v56 }
  0xfd   : > { %v1226_v1 = vpop.f32.mrf.mxu0  ;;  %v1274_v2 = vpop.f32.mrf.mxu1 }
  0xfe   : > { %979 = vst [vmem:[%s1705_s5] sm:$0xff] %v947_v61  ;;  %995 = vst [vmem:[%s1705_s5 + $0x80] sm:$0xff] %v963_v62  ;;  %v916_v3 = vadd.f32 %v1225_v63, %v1699_v51  ;;  %v932_v4 = vadd.f32 %v1273_v0, %v1699_v51 }
  0xff   : > { %v1227_v5 = vpop.f32.mrf.mxu0  ;;  %v1275_v6 = vpop.f32.mrf.mxu1 }
 0x100   : > { %v948_v7 = vmax.f32 %v916_v3, 0.0  ;;  %v964_v8 = vmax.f32 %v932_v4, 0.0  ;;  %v1228_v9 = vadd.f32 %v1227_v5, %v1226_v1  ;;  %v1276_v10 = vadd.f32 %v1275_v6, %v1274_v2 }
 0x101   : > { %v1229_v11 = vpop.f32.mrf.mxu0  ;;  %v1277_v12 = vpop.f32.mrf.mxu1 }
 0x102   : > { %980 = vst [vmem:[%s1705_s5 + $0x8] sm:$0xff] %v948_v7  ;;  %996 = vst [vmem:[%s1705_s5 + $0x88] sm:$0xff] %v964_v8  ;;  %v917_v13 = vadd.f32 %v1228_v9, %v1699_v51  ;;  %v933_v14 = vadd.f32 %v1276_v10, %v1699_v51 }
 0x103   : > { %v1230_v15 = vpop.f32.mrf.mxu0  ;;  %v1278_v16 = vpop.f32.mrf.mxu1 }
 0x104   : > { %v949_v17 = vmax.f32 %v917_v13, 0.0  ;;  %v965_v18 = vmax.f32 %v933_v14, 0.0  ;;  %v1231_v19 = vadd.f32 %v1230_v15, %v1229_v11  ;;  %v1279_v20 = vadd.f32 %v1278_v16, %v1277_v12 }
 0x105   : > { %v1232_v21 = vpop.f32.mrf.mxu0  ;;  %v1280_v22 = vpop.f32.mrf.mxu1 }
 0x106   : > { %981 = vst [vmem:[%s1705_s5 + $0x10] sm:$0xff] %v949_v17  ;;  %997 = vst [vmem:[%s1705_s5 + $0x90] sm:$0xff] %v965_v18  ;;  %v918_v23 = vadd.f32 %v1231_v19, %v1699_v51  ;;  %v934_v24 = vadd.f32 %v1279_v20, %v1699_v51 }
 0x107   : > { %v1233_v25 = vpop.f32.mrf.mxu0  ;;  %v1281_v26 = vpop.f32.mrf.mxu1 }
 0x108   : > { %v950_v27 = vmax.f32 %v918_v23, 0.0  ;;  %v966_v28 = vmax.f32 %v934_v24, 0.0  ;;  %v1234_v29 = vadd.f32 %v1233_v25, %v1232_v21  ;;  %v1282_v30 = vadd.f32 %v1281_v26, %v1280_v22 }
 0x109   : > { %v1235_v31 = vpop.f32.mrf.mxu0  ;;  %v1283_v32 = vpop.f32.mrf.mxu1 }
 0x10a   : > { %982 = vst [vmem:[%s1705_s5 + $0x18] sm:$0xff] %v950_v27  ;;  %998 = vst [vmem:[%s1705_s5 + $0x98] sm:$0xff] %v966_v28  ;;  %v919_v33 = vadd.f32 %v1234_v29, %v1699_v51  ;;  %v935_v34 = vadd.f32 %v1282_v30, %v1699_v51 }
 0x10b   : > { %v1236_v35 = vpop.f32.mrf.mxu0  ;;  %v1284_v36 = vpop.f32.mrf.mxu1 }
 0x10c   : > { %v951_v37 = vmax.f32 %v919_v33, 0.0  ;;  %v967_v38 = vmax.f32 %v935_v34, 0.0  ;;  %v1237_v39 = vadd.f32 %v1236_v35, %v1235_v31  ;;  %v1285_v40 = vadd.f32 %v1284_v36, %v1283_v32 }
 0x10d   : > { %v1238_v41 = vpop.f32.mrf.mxu0  ;;  %v1286_v42 = vpop.f32.mrf.mxu1 }
 0x10e   : > { %983 = vst [vmem:[%s1705_s5 + $0x20] sm:$0xff] %v951_v37  ;;  %999 = vst [vmem:[%s1705_s5 + $0xa0] sm:$0xff] %v967_v38  ;;  %v920_v43 = vadd.f32 %v1237_v39, %v1699_v51  ;;  %v936_v44 = vadd.f32 %v1285_v40, %v1699_v51 }
 0x10f   : > { %v1239_v45 = vpop.f32.mrf.mxu0  ;;  %v1287_v46 = vpop.f32.mrf.mxu1 }
 0x110   : > { %v952_v47 = vmax.f32 %v920_v43, 0.0  ;;  %v968_v48 = vmax.f32 %v936_v44, 0.0  ;;  %v1240_v49 = vadd.f32 %v1239_v45, %v1238_v41  ;;  %v1288_v50 = vadd.f32 %v1287_v46, %v1286_v42 }
 0x111   : > { %v1241_v52 = vpop.f32.mrf.mxu0  ;;  %v1289_v53 = vpop.f32.mrf.mxu1 }
 0x112   : > { %984 = vst [vmem:[%s1705_s5 + $0x28] sm:$0xff] %v952_v47  ;;  %1000 = vst [vmem:[%s1705_s5 + $0xa8] sm:$0xff] %v968_v48  ;;  %v921_v54 = vadd.f32 %v1240_v49, %v1699_v51  ;;  %v937_v55 = vadd.f32 %v1288_v50, %v1699_v51 }
 0x113   : > { %v1242_v56 = vpop.f32.mrf.mxu0  ;;  %v1290_v57 = vpop.f32.mrf.mxu1 }
 0x114   : > { %v953_v58 = vmax.f32 %v921_v54, 0.0  ;;  %v969_v59 = vmax.f32 %v937_v55, 0.0  ;;  %v1243_v60 = vadd.f32 %v1242_v56, %v1241_v52  ;;  %v1291_v61 = vadd.f32 %v1290_v57, %v1289_v53 }
 0x115   : > { %v1244_v62 = vpop.f32.mrf.mxu0  ;;  %v1292_v63 = vpop.f32.mrf.mxu1 }
 0x116   : > { %985 = vst [vmem:[%s1705_s5 + $0x30] sm:$0xff] %v953_v58  ;;  %1001 = vst [vmem:[%s1705_s5 + $0xb0] sm:$0xff] %v969_v59  ;;  %v922_v0 = vadd.f32 %v1243_v60, %v1699_v51  ;;  %v938_v1 = vadd.f32 %v1291_v61, %v1699_v51 }
 0x117   : > { %v1245_v2 = vpop.f32.mrf.mxu0  ;;  %v1293_v3 = vpop.f32.mrf.mxu1 }
 0x118   : > { %v954_v4 = vmax.f32 %v922_v0, 0.0  ;;  %v970_v5 = vmax.f32 %v938_v1, 0.0  ;;  %v1246_v6 = vadd.f32 %v1245_v2, %v1244_v62  ;;  %v1294_v7 = vadd.f32 %v1293_v3, %v1292_v63 }
 0x119   : > { %v1247_v8 = vpop.f32.mrf.mxu0  ;;  %v1295_v9 = vpop.f32.mrf.mxu1 }
 0x11a   : > { %986 = vst [vmem:[%s1705_s5 + $0x38] sm:$0xff] %v954_v4  ;;  %1002 = vst [vmem:[%s1705_s5 + $0xb8] sm:$0xff] %v970_v5  ;;  %v923_v10 = vadd.f32 %v1246_v6, %v1699_v51  ;;  %v939_v11 = vadd.f32 %v1294_v7, %v1699_v51 }
 0x11b   : > { %v1248_v12 = vpop.f32.mrf.mxu0  ;;  %v1296_v13 = vpop.f32.mrf.mxu1 }
 0x11c   : > { %v955_v14 = vmax.f32 %v923_v10, 0.0  ;;  %v971_v15 = vmax.f32 %v939_v11, 0.0  ;;  %v1249_v16 = vadd.f32 %v1248_v12, %v1247_v8  ;;  %v1297_v17 = vadd.f32 %v1296_v13, %v1295_v9 }
 0x11d   : > { %v1250_v18 = vpop.f32.mrf.mxu0  ;;  %v1298_v19 = vpop.f32.mrf.mxu1 }
 0x11e   : > { %987 = vst [vmem:[%s1705_s5 + $0x40] sm:$0xff] %v955_v14  ;;  %1003 = vst [vmem:[%s1705_s5 + $0xc0] sm:$0xff] %v971_v15  ;;  %v924_v20 = vadd.f32 %v1249_v16, %v1699_v51  ;;  %v940_v21 = vadd.f32 %v1297_v17, %v1699_v51 }
 0x11f   : > { %v1251_v22 = vpop.f32.mrf.mxu0  ;;  %v1299_v23 = vpop.f32.mrf.mxu1 }
 0x120   : > { %v956_v24 = vmax.f32 %v924_v20, 0.0  ;;  %v972_v25 = vmax.f32 %v940_v21, 0.0  ;;  %v1252_v26 = vadd.f32 %v1251_v22, %v1250_v18  ;;  %v1300_v27 = vadd.f32 %v1299_v23, %v1298_v19 }
 0x121   : > { %v1253_v28 = vpop.f32.mrf.mxu0  ;;  %v1301_v29 = vpop.f32.mrf.mxu1 }
 0x122   : > { %988 = vst [vmem:[%s1705_s5 + $0x48] sm:$0xff] %v956_v24  ;;  %1004 = vst [vmem:[%s1705_s5 + $0xc8] sm:$0xff] %v972_v25  ;;  %v925_v30 = vadd.f32 %v1252_v26, %v1699_v51  ;;  %v941_v31 = vadd.f32 %v1300_v27, %v1699_v51 }
 0x123   : > { %v1254_v32 = vpop.f32.mrf.mxu0  ;;  %v1302_v33 = vpop.f32.mrf.mxu1 }
 0x124   : > { %v957_v34 = vmax.f32 %v925_v30, 0.0  ;;  %v973_v35 = vmax.f32 %v941_v31, 0.0  ;;  %v1255_v36 = vadd.f32 %v1254_v32, %v1253_v28  ;;  %v1303_v37 = vadd.f32 %v1302_v33, %v1301_v29 }
 0x125   : > { %v1256_v38 = vpop.f32.mrf.mxu0  ;;  %v1304_v39 = vpop.f32.mrf.mxu1 }
 0x126   : > { %989 = vst [vmem:[%s1705_s5 + $0x50] sm:$0xff] %v957_v34  ;;  %1005 = vst [vmem:[%s1705_s5 + $0xd0] sm:$0xff] %v973_v35  ;;  %v926_v40 = vadd.f32 %v1255_v36, %v1699_v51  ;;  %v942_v41 = vadd.f32 %v1303_v37, %v1699_v51 }
 0x127   : > { %v1257_v42 = vpop.f32.mrf.mxu0  ;;  %v1305_v43 = vpop.f32.mrf.mxu1 }
 0x128   : > { %v958_v44 = vmax.f32 %v926_v40, 0.0  ;;  %v974_v45 = vmax.f32 %v942_v41, 0.0  ;;  %v1258_v46 = vadd.f32 %v1257_v42, %v1256_v38  ;;  %v1306_v47 = vadd.f32 %v1305_v43, %v1304_v39 }
 0x129   : > { %v1259_v48 = vpop.f32.mrf.mxu0  ;;  %v1307_v49 = vpop.f32.mrf.mxu1 }
 0x12a   : > { %990 = vst [vmem:[%s1705_s5 + $0x58] sm:$0xff] %v958_v44  ;;  %1006 = vst [vmem:[%s1705_s5 + $0xd8] sm:$0xff] %v974_v45  ;;  %v927_v50 = vadd.f32 %v1258_v46, %v1699_v51  ;;  %v943_v52 = vadd.f32 %v1306_v47, %v1699_v51 }
 0x12b   : > { %v1260_v53 = vpop.f32.mrf.mxu0  ;;  %v1308_v54 = vpop.f32.mrf.mxu1 }
 0x12c   : > { %v959_v55 = vmax.f32 %v927_v50, 0.0  ;;  %v975_v56 = vmax.f32 %v943_v52, 0.0  ;;  %v1261_v57 = vadd.f32 %v1260_v53, %v1259_v48  ;;  %v1309_v58 = vadd.f32 %v1308_v54, %v1307_v49 }
 0x12d   : > { %v1262_v59 = vpop.f32.mrf.mxu0  ;;  %v1310_v60 = vpop.f32.mrf.mxu1 }
 0x12e   : > { %991 = vst [vmem:[%s1705_s5 + $0x60] sm:$0xff] %v959_v55  ;;  %1007 = vst [vmem:[%s1705_s5 + $0xe0] sm:$0xff] %v975_v56  ;;  %v928_v61 = vadd.f32 %v1261_v57, %v1699_v51  ;;  %v944_v62 = vadd.f32 %v1309_v58, %v1699_v51 }
 0x12f   : > { %v1263_v63 = vpop.f32.mrf.mxu0  ;;  %v1311_v0 = vpop.f32.mrf.mxu1 }
 0x130   : > { %v960_v1 = vmax.f32 %v928_v61, 0.0  ;;  %v976_v2 = vmax.f32 %v944_v62, 0.0  ;;  %v1264_v3 = vadd.f32 %v1263_v63, %v1262_v59  ;;  %v1312_v4 = vadd.f32 %v1311_v0, %v1310_v60 }
 0x131   : > { %v1265_v5 = vpop.f32.mrf.mxu0  ;;  %v1313_v6 = vpop.f32.mrf.mxu1 }
 0x132   : > { %992 = vst [vmem:[%s1705_s5 + $0x68] sm:$0xff] %v960_v1  ;;  %1008 = vst [vmem:[%s1705_s5 + $0xe8] sm:$0xff] %v976_v2  ;;  %v929_v7 = vadd.f32 %v1264_v3, %v1699_v51  ;;  %v945_v8 = vadd.f32 %v1312_v4, %v1699_v51 }
 0x133   : > { %v1266_v9 = vpop.f32.mrf.mxu0  ;;  %v1314_v10 = vpop.f32.mrf.mxu1 }
 0x134   : > { %v961_v11 = vmax.f32 %v929_v7, 0.0  ;;  %v977_v12 = vmax.f32 %v945_v8, 0.0  ;;  %v1267_v13 = vadd.f32 %v1266_v9, %v1265_v5  ;;  %v1315_v14 = vadd.f32 %v1314_v10, %v1313_v6 }
 0x136   : > { %993 = vst [vmem:[%s1705_s5 + $0x70] sm:$0xff] %v961_v11  ;;  %1009 = vst [vmem:[%s1705_s5 + $0xf0] sm:$0xff] %v977_v12  ;;  %v930_v15 = vadd.f32 %v1267_v13, %v1699_v51  ;;  %v946_v16 = vadd.f32 %v1315_v14, %v1699_v51 }
 0x138   : > { %v962_v17 = vmax.f32 %v930_v15, 0.0  ;;  %v978_v18 = vmax.f32 %v946_v16, 0.0 }
 0x13a   : > { %994 = vst [vmem:[%s1705_s5 + $0x78] sm:$0xff] %v962_v17  ;;  %1010 = vst [vmem:[%s1705_s5 + $0xf8] sm:$0xff] %v978_v18 }
 0x13b   : > { %1466 = shalt.err (!%p1463_p5)
}
 0x13c   : > { %s1467_s26 = scalar_lea.hbm %s1772_s11, 4096  ;;  %s1471_s30 = scalar_lea.hbm %s1828_s3, 32768 }
 0x13d   : > { %p1468_p6 = scmp.ne.s32.totalorder %s1772_s11, %s1467_s26  ;;  %p1472_p10 = scmp.lt.s32.totalorder %s1772_s11, %s1828_s3 }
 0x13e   : > { %p1473_p11 = scmp.lt.s32.totalorder %s1471_s30, %s1467_s26 }
 0x13f   : > { %p1469_p7 = pnand %p1468_p6, %p1594_p4 }
 0x140   : > { %p1474_p12 = por %p1473_p11, %p1472_p10 }
 0x141   : > { %p1470_p9 = pneg %p1469_p7 }
 0x143   : > { %p1475_p13 = pnand %p1474_p12, %p1470_p9 }
 0x145   : > { %1478 = shalt.err (!%p1475_p13)
}
 0x146   : > { %s1532_s7 = smov 128   ;;  %s1533_s5 = smov 8  }
 0x147   : > { %1332 = dma.vmem_to_hbm [thread:$0]  (%p1594_p4), %s1774_s8, 4096, %s1772_s11, %s1780_s15, %s1532_s7, %s1532_s7, %s1533_s5  }
 0x148 PF: > { %p1338_p0 = scmp.ge.s32.totalorder %s1529_s17, 2  ;;  %s1041_s28 = sand.u32 1, %s1509_s12  }
 0x149   : > { %s1042_s9 = scalar_lea.sflag [#allocation4], %s1041_s28 }
 0x14a   : > { %p1335_p1 = pnand %p1338_p0, %p1601_p8 }
 0x14c   : > { %p1336_p2 = pneg %p1335_p1 }
 0x14e   : > { %1504 = dma.done.wait (%p1336_p2), %s1042_s9, 4096  }
 0x14f   : > { %1506 = vsyncadd (%p1336_p2), %s1042_s9, 4294963200  ;;  %s16_s17 = sadd.s32 1, %s1529_s17   ;;  %s1831_s12 = smov %s1513_s13 }
 0x150   : > { %p13_p3 = scmp.ge.s32.totalorder %s16_s17, 10   ;;  %s1832_s13 = smov %s1517_s14 }
 0x151   : > { %s1833_s14 = smov %s1607_s25  ;;  %s1834_s15 = smov %s1525_s16 }
 0x152   : > { %s1835_s16 = smov %s1837_s20  ;;  %15 = sbr.rel (!%p13_p3) target bundleno = 4 (0x4), region = 81 }
 0x157   :  { %1047 = vsyncpa [#allocation4], 1 }
 0x158   :  { %1049 = vsyncpa [#allocation4 + $0x1], 1 }

</bundles_post_ra>
